<compile_context>
chip_gen: v5e
topology: v5e:2x2
jax: 0.10.0
libtpu: 0.0.40
codegen_flags: <defaults>
</compile_context>

<pallas_src>
import functools

import jax
import jax.numpy as jnp
from jax.experimental import pallas as pl
from jax.experimental.pallas import tpu as pltpu

_LANE = 128
_HBM_TILE_BYTES = 4 << 20     # target bytes of x per grid step
_VMEM_TILE_BUDGET = 24 << 20  # double-buffered x+y tile budget (v7x-safe)


def _round_up(v, m):
    return (v + m - 1) // m * m


def _pick_lane_tile(batch, d, itemsize):
    """Largest multiple-of-128 D tile under HBM-step and VMEM budgets."""
    d_pad = _round_up(d, _LANE)
    # HBM budget: ~4 MiB of x per step amortizes per-step overhead.
    td = (_HBM_TILE_BYTES // max(1, batch * itemsize)) // _LANE * _LANE
    td = max(_LANE, td)
    # VMEM budget: 2 buffers x (x tile + y tile) must fit comfortably.
    td_vmem = (_VMEM_TILE_BUDGET // max(1, 4 * batch * itemsize)) // _LANE * _LANE
    td_vmem = max(_LANE, td_vmem)
    td = min(td, td_vmem, d_pad)
    # Keep >= ~4 grid steps when D is large enough (v7x: 2 TCs x 2-deep pipe).
    if d_pad >= 16 * _LANE and td > d_pad // 4:
        td = max(4 * _LANE, (d_pad // 4) // _LANE * _LANE)
    return td


# ----------------------------------------------------------------------------
# Kernels
# ----------------------------------------------------------------------------
def _running_mean_train_kernel(inv_n_ref, x_ref, mean_ref, y_ref, new_mean_ref,
                               *, inv_batch):
    # inv_n_ref: SMEM (1,)  f32   (1 / (n + 1), precomputed in the wrapper)
    # x_ref:     VMEM (B, TD)
    # mean_ref:  VMEM (1, TD)
    # y_ref:     VMEM (B, TD)     new_mean_ref: VMEM (1, TD)
    inv_n = inv_n_ref[0]

    xf = x_ref[...].astype(jnp.float32)
    # Per-lane (column) reduce on the VPU/XLU -- hidden under the DMA.
    batch_mean = jnp.sum(xf, axis=0, keepdims=True) * inv_batch

    mean = mean_ref[...].astype(jnp.float32)
    # Incremental form of (n-1)/n * mean + 1/n * batch_mean.
    new_mean = mean + (batch_mean - mean) * inv_n

    new_mean_ref[...] = new_mean.astype(new_mean_ref.dtype)
    y_ref[...] = (xf - new_mean).astype(y_ref.dtype)


def _running_mean_eval_kernel(x_ref, mean_ref, y_ref):
    y_ref[...] = (x_ref[...] - mean_ref[...]).astype(y_ref.dtype)


# ----------------------------------------------------------------------------
# Wrapper
# ----------------------------------------------------------------------------
def running_mean_forward(x, mean, n, *, training=True, update_mean=True,
                         lane_tile=None):
    """Functional equivalent of RunningMean.forward.

    Args:
      x:    (B, D) float32
      mean: (1, D) float32 buffer
      n:    (1,)   float32 buffer
      lane_tile: optional override of the D tile size (testing only).
    Returns:
      (y, new_mean, new_n) -- y has the same shape/dtype as x.
    """
    B, D = x.shape
    itemsize = jnp.dtype(x.dtype).itemsize

    td = lane_tile if lane_tile is not None else _pick_lane_tile(B, D, itemsize)
    num_tiles = pl.cdiv(D, td)   # partial last block handled by Pallas masking

    # VMEM budget: double-buffered x/y tiles + mean tiles + headroom.
    tile_bytes = itemsize * (2 * B * td + 2 * td)
    vmem_limit = int(min(48 << 20, max(4 << 20, 2 * tile_bytes + (2 << 20))))
    cparams = pltpu.CompilerParams(
        dimension_semantics=("parallel",),   # D tiles are fully independent
        vmem_limit_bytes=vmem_limit,
    )

    smem = pltpu.MemorySpace.SMEM

    if training and update_mean:
        inv_n = 1.0 / (n + 1.0)              # one scalar op, done once in XLA
        kernel = functools.partial(_running_mean_train_kernel,
                                   inv_batch=1.0 / B)
        cost = pl.CostEstimate(
            flops=5 * B * D,
            transcendentals=0,
            bytes_accessed=int(itemsize * (2 * B * D + 2 * D)),
        )
        y, new_mean = pl.pallas_call(
            kernel,
            out_shape=(
                jax.ShapeDtypeStruct((B, D), x.dtype),
                jax.ShapeDtypeStruct((1, D), mean.dtype),
            ),
            grid=(num_tiles,),
            in_specs=[
                pl.BlockSpec(memory_space=smem),               # inv_n (untiled)
                pl.BlockSpec((B, td), lambda j: (0, j)),        # x tile
                pl.BlockSpec((1, td), lambda j: (0, j)),        # mean tile
            ],
            out_specs=(
                pl.BlockSpec((B, td), lambda j: (0, j)),        # y tile
                pl.BlockSpec((1, td), lambda j: (0, j)),        # new mean tile
            ),
            compiler_params=cparams,
            cost_estimate=cost,
        )(inv_n, x, mean)

        new_n = n + 1.0  # trivial scalar buffer update, done in plain JAX
        return y, new_mean, new_n

    else:
        cost = pl.CostEstimate(
            flops=B * D,
            transcendentals=0,
            bytes_accessed=int(itemsize * (2 * B * D + D)),
        )
        y = pl.pallas_call(
            _running_mean_eval_kernel,
            out_shape=jax.ShapeDtypeStruct((B, D), x.dtype),
            grid=(num_tiles,),
            in_specs=[
                pl.BlockSpec((B, td), lambda j: (0, j)),
                pl.BlockSpec((1, td), lambda j: (0, j)),
            ],
            out_specs=pl.BlockSpec((B, td), lambda j: (0, j)),
            compiler_params=cparams,
            cost_estimate=cost,
        )(x, mean)
        return y, mean, n


# ----------------------------------------------------------------------------
# Pure-JAX reference
# ----------------------------------------------------------------------------
def _reference(x, mean, n, *, training=True):
    if training:
        n_new = n + 1.0
        mean_new = ((n_new - 1.0) / n_new * mean
                    + (1.0 / n_new) * jnp.mean(x, axis=0, keepdims=True))
        return x - mean_new, mean_new, n_new
    return x - mean, mean, n


if __name__ == "__main__":
    key = jax.random.PRNGKey(0)

    # ------------------------------------------------------------------
    # Case 1: module-scale shapes (B=8, D=32); single partial lane block.
    # ------------------------------------------------------------------
    B, D = 8, 32
    k1, k2, key = jax.random.split(key, 3)
    x1 = jax.random.normal(k1, (B, D), dtype=jnp.float32)
    x2 = jax.random.normal(k2, (B, D), dtype=jnp.float32)
    mean0 = jnp.zeros((1, D), dtype=jnp.float32)
    n0 = jnp.zeros((1,), dtype=jnp.float32)

    # training step 1
    y1, m1, n1 = running_mean_forward(x1, mean0, n0, training=True)
    jax.block_until_ready((y1, m1, n1))
    y1_r, m1_r, n1_r = _reference(x1, mean0, n0, training=True)
    assert jnp.allclose(n1, n1_r, atol=1e-6)
    assert jnp.allclose(m1, m1_r, atol=1e-5)
    assert jnp.allclose(y1, y1_r, atol=1e-5)

    # training step 2 (stateful running mean)
    y2, m2, n2 = running_mean_forward(x2, m1, n1, training=True)
    jax.block_until_ready((y2, m2, n2))
    y2_r, m2_r, n2_r = _reference(x2, m1_r, n1_r, training=True)
    assert jnp.allclose(n2, n2_r, atol=1e-6)
    assert jnp.allclose(m2, m2_r, atol=1e-5)
    assert jnp.allclose(y2, y2_r, atol=1e-5)

    # eval step (no update)
    ye, me, ne = running_mean_forward(x2, m2, n2, training=False)
    jax.block_until_ready(ye)
    assert jnp.allclose(ye, x2 - m2, atol=1e-5)
    assert jnp.allclose(me, m2) and jnp.allclose(ne, n2)

    # ------------------------------------------------------------------
    # Case 2: D not a multiple of 128 (B=16, D=200) -> masked partial block,
    # no wrapper-side pad/slice.
    # ------------------------------------------------------------------
    Bb, Db = 16, 200
    k3, key = jax.random.split(key)
    xb = jax.random.normal(k3, (Bb, Db), dtype=jnp.float32)
    mb0 = jnp.zeros((1, Db), dtype=jnp.float32)
    nb0 = jnp.zeros((1,), dtype=jnp.float32)
    yb, mb, nb = running_mean_forward(xb, mb0, nb0, training=True)
    jax.block_until_ready((yb, mb, nb))
    yb_r, mb_r, nb_r = _reference(xb, mb0, nb0, training=True)
    assert jnp.allclose(nb, nb_r, atol=1e-6)
    assert jnp.allclose(mb, mb_r, atol=1e-5)
    assert jnp.allclose(yb, yb_r, atol=1e-5)
    yb_e, _, _ = running_mean_forward(xb, mb, nb, training=False)
    jax.block_until_ready(yb_e)
    assert jnp.allclose(yb_e, xb - mb, atol=1e-5)

    # ------------------------------------------------------------------
    # Case 3: multi-tile grid with a partial last block (B=8, D=330,
    # forced 128-lane tiles -> 3 grid steps).
    # ------------------------------------------------------------------
    Bc, Dc = 8, 330
    k4, key = jax.random.split(key)
    xc = jax.random.normal(k4, (Bc, Dc), dtype=jnp.float32)
    mc0 = jnp.zeros((1, Dc), dtype=jnp.float32)
    nc0 = jnp.zeros((1,), dtype=jnp.float32)
    yc, mc, nc = running_mean_forward(xc, mc0, nc0, training=True,
                                      lane_tile=128)
    jax.block_until_ready((yc, mc, nc))
    yc_r, mc_r, nc_r = _reference(xc, mc0, nc0, training=True)
    assert jnp.allclose(nc, nc_r, atol=1e-6)
    assert jnp.allclose(mc, mc_r, atol=1e-5)
    assert jnp.allclose(yc, yc_r, atol=1e-5)
    yc_e, _, _ = running_mean_forward(xc, mc, nc, training=False,
                                      lane_tile=128)
    jax.block_until_ready(yc_e)
    assert jnp.allclose(yc_e, xc - mc, atol=1e-5)

    print("KERNEL_OK")
</pallas_src>

<mosaic_0001>
module attributes {stable_mosaic.version = 11 : i64} {
  func.func @_running_mean_train_kernel(%arg0: i32, %arg1: memref<1xf32, #tpu.memory_space<smem>>, %arg2: memref<8x128xf32, #tpu.memory_space<vmem>>, %arg3: memref<1x128xf32, #tpu.memory_space<vmem>>, %arg4: memref<8x128xf32, #tpu.memory_space<vmem>>, %arg5: memref<1x128xf32, #tpu.memory_space<vmem>>) attributes {dimension_semantics = [#tpu.dimension_semantics<parallel>], iteration_bounds = array<i64: 1>, scalar_prefetch = 0 : i64, scratch_operands = 0 : i64, tpu.core_type = #tpu.core_type<tc>, window_params = [{transform_indices = @transform_0, window_bounds = array<i64: 1>}, {transform_indices = @transform_1, window_bounds = array<i64: 8, 128>}, {transform_indices = @transform_2, window_bounds = array<i64: 1, 128>}, {transform_indices = @transform_3, window_bounds = array<i64: 8, 128>}, {transform_indices = @transform_4, window_bounds = array<i64: 1, 128>}]} {
    %c0 = arith.constant 0 : index
    %0 = memref.load %arg1[%c0] : memref<1xf32, #tpu.memory_space<smem>>
    %c0_0 = arith.constant 0 : index
    %c0_1 = arith.constant 0 : index
    %1 = vector.load %arg2[%c0_0, %c0_1] : memref<8x128xf32, #tpu.memory_space<vmem>>, vector<8x128xf32>
    %cst = arith.constant dense<0.000000e+00> : vector<128xf32>
    %2 = vector.multi_reduction <add>, %1, %cst [0] : vector<8x128xf32> to vector<128xf32>
    %3 = vector.shape_cast %2 : vector<128xf32> to vector<1x128xf32>
    %cst_2 = arith.constant 1.250000e-01 : f32
    %4 = vector.broadcast %cst_2 : f32 to vector<1x128xf32>
    %5 = arith.mulf %3, %4 : vector<1x128xf32>
    %c0_3 = arith.constant 0 : index
    %c0_4 = arith.constant 0 : index
    %6 = vector.load %arg3[%c0_3, %c0_4] : memref<1x128xf32, #tpu.memory_space<vmem>>, vector<1x128xf32>
    %7 = arith.subf %5, %6 : vector<1x128xf32>
    %8 = vector.broadcast %0 : f32 to vector<1x128xf32>
    %9 = arith.mulf %7, %8 : vector<1x128xf32>
    %10 = arith.addf %6, %9 : vector<1x128xf32>
    %c0_5 = arith.constant 0 : index
    %c0_6 = arith.constant 0 : index
    %11 = vector.load %arg5[%c0_5, %c0_6] : memref<1x128xf32, #tpu.memory_space<vmem>>, vector<1x128xf32>
    tpu.vector_store %arg5[%c0_5, %c0_6], %10 {strides = array<i32>} : memref<1x128xf32, #tpu.memory_space<vmem>>, vector<1x128xf32>,
    %12 = vector.broadcast %10 : vector<1x128xf32> to vector<8x128xf32>
    %13 = arith.subf %1, %12 : vector<8x128xf32>
    %c0_7 = arith.constant 0 : index
    %c0_8 = arith.constant 0 : index
    %14 = vector.load %arg4[%c0_7, %c0_8] : memref<8x128xf32, #tpu.memory_space<vmem>>, vector<8x128xf32>
    tpu.vector_store %arg4[%c0_7, %c0_8], %13 {strides = array<i32>} : memref<8x128xf32, #tpu.memory_space<vmem>>, vector<8x128xf32>,
    return
  }
  func.func @transform_0(%arg0: i32) -> i32 {
    %c0_i32 = arith.constant 0 : i32
    %c0_i32_0 = arith.constant 0 : i32
    return %c0_i32 : i32
  }
  func.func @transform_1(%arg0: i32) -> (i32, i32) {
    %c0_i32 = arith.constant 0 : i32
    %c0_i32_0 = arith.constant 0 : i32
    return %c0_i32, %arg0 : i32, i32
  }
  func.func @transform_2(%arg0: i32) -> (i32, i32) {
    %c0_i32 = arith.constant 0 : i32
    %c0_i32_0 = arith.constant 0 : i32
    return %c0_i32, %arg0 : i32, i32
  }
  func.func @transform_3(%arg0: i32) -> (i32, i32) {
    %c0_i32 = arith.constant 0 : i32
    %c0_i32_0 = arith.constant 0 : i32
    return %c0_i32, %arg0 : i32, i32
  }
  func.func @transform_4(%arg0: i32) -> (i32, i32) {
    %c0_i32 = arith.constant 0 : i32
    %c0_i32_0 = arith.constant 0 : i32
    return %c0_i32, %arg0 : i32, i32
  }
}

</mosaic_0001>

<bundles_post_ra>
// kernel: tpu_custom_call.1
= control target key start
LH: loop header
LB: loop body
LE: loop exit
PB: predicated region body
PF: predicated region fallthrough
CT: control target
= control target key end

     0   :  { %11 = vsyncpa [#allocation4], 0  ;;  %s210_s0 = inlined_call_operand.<no memory space> [shape: f32[1], index: 0, kind: input, shape index: {}]   ;;  %s211_s1 = inlined_call_operand.hbm [shape: f32[8,32], index: 1, kind: input, shape index: {}]   ;;  %s212_s2 = inlined_call_operand.vmem [shape: f32[1,32], index: 2, kind: input, shape index: {}]   ;;  %s213_s3 = inlined_call_operand.hbm [shape: f32[8,32], index: 3, kind: output, shape index: {0}]   ;;  %s214_s4 = inlined_call_operand.hbm [shape: f32[1,32], index: 4, kind: output, shape index: {1}]  }
   0x1   :  { %12 = vsyncpa [#allocation5], 0 }
   0x2   :  { %13 = vsyncpa [#allocation8], 0  ;;  %s21_s17 = sshll.u32 %s211_s1, 4  ;;  %s167_s18 = smov [#allocation3]   ;;  %s22_s17 = int_to_ptr.hbm [resolvable:$true] %s21_s17 }
   0x3   :  { %s23_s19 = sshll.u32 %s167_s18, 4  ;;  %s24_s19 = int_to_ptr.vmem [resolvable:$true] %s23_s19 }
   0x4   :  { %26 = dma.hbm_to_vmem [thread:$0]  %s22_s17, 128, %s24_s19, [#allocation4]  }
   0x5   :  { %161 = dma.done.wait [#allocation4], 128  }
   0x6   :  { %162 = vsyncadd [#allocation4], 4294967168  ;;  %v34_v0 = vld [vmem:[#allocation3] sm:$0xff]  ;;  %v44_v9 = vstv %s210_s0  ;;  %s168_s23 = smov [#allocation7]   ;;  %s71_s27 = sshll.u32 %s214_s4, 4  ;;  %s72_s27 = int_to_ptr.hbm [resolvable:$true] %s71_s27 }
   0x7   :  { %v35_v1 = vrot.slane %v34_v0, 4  ;;  %v42_v7 = vld [vmem:[%s212_s2] sm:$0x1]  ;;  %s69_s24 = sshll.u32 %s168_s23, 4  ;;  %s169_s28 = smov [#allocation6]   ;;  %s70_s24 = int_to_ptr.vmem [resolvable:$true] %s69_s24 }
   0x8   :  { %s58_s29 = sshll.u32 %s169_s28, 4  ;;  %s60_s5 = sshll.u32 %s213_s3, 4  ;;  %s59_s29 = int_to_ptr.vmem [resolvable:$true] %s58_s29  ;;  %s61_s5 = int_to_ptr.hbm [resolvable:$true] %s60_s5 }
   0x9   :  { %v36_v2 = vadd.f32 %v35_v1, %v34_v0 }
   0xb   :  { %v37_v3 = vrot.slane %v36_v2, 2 }
   0xd   :  { %v38_v4 = vadd.f32 %v37_v3, %v36_v2 }
   0xf   :  { %v39_v5 = vrot.slane %v38_v4, 1 }
  0x11   :  { %v40_v6 = vadd.f32 %v39_v5, %v38_v4 }
  0x13   :  { %v41_v8 = vmul.f32 0.125, %v40_v6 }
  0x15   :  { %v43_v10 = vsub.f32 %v41_v8, %v42_v7 }
  0x17   :  { %v45_v11 = vmul.f32 %v44_v9, %v43_v10 }
  0x19   :  { %v46_v12 = vadd.f32 %v45_v11, %v42_v7 }
  0x1b   :  { %47 = vst [vmem:[#allocation7] sm:$0x1] %v46_v12  ;;  %v49_v13 = vperm.slane %v46_v12, 0 }
  0x1c   :  { %74 = dma.vmem_to_hbm [thread:$0]  %s70_s24, 16, %s72_s27, [#allocation8]  }
  0x1d   :  { %v51_v14 = vsub.f32 %v34_v0, %v49_v13 }
  0x1f   :  { %52 = vst [vmem:[#allocation6] sm:$0xff] %v51_v14 }
  0x20   :  { %63 = dma.vmem_to_hbm [thread:$0]  %s59_s29, 128, %s61_s5, [#allocation5]  }
  0x21   :  { %163 = dma.done.wait [#allocation5], 128  }
  0x22   :  { %164 = vsyncadd [#allocation5], 4294967168 }
  0x23   :  { %165 = dma.done.wait [#allocation8], 16  }
  0x24   :  { %166 = vsyncadd [#allocation8], 4294967280 }
  0x25   :  { %83 = vsyncpa [#allocation4], 1 }
  0x26   :  { %84 = vsyncpa [#allocation5], 1 }
  0x27   :  { %85 = vsyncpa [#allocation8], 1 }

</bundles_post_ra>
